<compile_context>
chip_gen: v6e
topology: v6e:2x2x1
jax: 0.10.0
libtpu: 0.0.40
codegen_flags: <defaults>
</compile_context>

<pallas_src>
import numpy as np
import jax
import jax.numpy as jnp
from jax import lax
from jax.experimental import pallas as pl
from jax.experimental.pallas import tpu as pltpu

# ---------------------------- model hyper-params ----------------------------
INPUT_DIM = 8          # acoustic feature dim
EHD = 32               # encoder_hidden_dim
DHD = 32               # decoder_hidden_dim
KVS = 128              # key_value_size (hard-coded to 128 in the PyTorch module)
EMBED = 2 * KVS        # embed_dim is overridden to 2*key_value_size
VOCAB = 40
NUM_PBLSTM = 4         # Encoder num_layers (all 4 pBLSTMs SHARE weights: [m]*4)

VMEM_SPEC = pl.BlockSpec(memory_space=pltpu.MemorySpace.VMEM)

# ------------------------------ Pallas kernels ------------------------------

def _linear_kernel(x_ref, wt_ref, b_ref, o_ref):
    """o = x @ W^T + b  (W pre-transposed).  Used for all hoisted input projections and K/V."""
    o_ref[...] = (jnp.dot(x_ref[...], wt_ref[...], preferred_element_type=jnp.float32)
                  + b_ref[...])


def _bilstm_rec_kernel(gx_ref, whh_ref, hs_ref):
    """Merged fwd+bwd LSTM recurrence over a whole sequence.

    gx_ref : (T, B, 8H)  precomputed x@Wih + b for BOTH directions, gate layout
             [i_f i_r | f_f f_r | o_f o_r | g_f g_r]   (sigmoid block first, tanh block last)
    whh_ref: (2H, 8H)    block-diagonal recurrent weights (rows [h_f | h_r])
    hs_ref : (T, B, 2H)  per-step hidden states [h_f | h_r]
    Only h @ Whh + gate nonlinearity + elementwise state update sit on the serial chain.
    """
    T = gx_ref.shape[0]
    B = gx_ref.shape[1]
    H2 = whh_ref.shape[0]          # 2H
    H6 = 3 * H2                    # sigmoid block width (i|f|o)

    def step(t, carry):
        h, c = carry
        g = gx_ref[t] + jnp.dot(h, whh_ref[...], preferred_element_type=jnp.float32)
        sg = jax.nn.sigmoid(g[:, :H6])         # one EUP pass over i|f|o
        gg = jnp.tanh(g[:, H6:])               # one EUP pass over g
        c = sg[:, H2:2 * H2] * c + sg[:, :H2] * gg
        h = sg[:, 2 * H2:H6] * jnp.tanh(c)
        hs_ref[t] = h
        return (h, c)

    z = jnp.zeros((B, H2), jnp.float32)
    lax.fori_loop(0, T, step, (z, z))


def _decoder_kernel(gx0_ref, key_ref, value_ref, mask_ref,
                    w0_ref, w1_ref, b1_ref, charw_ref, charb_ref,
                    preds_ref, attn_ref):
    """Fused LAS decoder: all max_len steps of (dec0 cell -> dec1 cell -> attention ->
    weight-tied char projection) in ONE kernel; state carried in registers/VMEM.

    gx0_ref : (L, B, 4*DHD)   hoisted char_embed @ Wih0[:EMBED] + b0 (teacher forcing inputs)
    key/value: (B, S, KVS)    resident in VMEM for the whole decode
    mask_ref : (B, S)         1.0 at padded encoder positions
    w0_ref   : (KVS+DHD, 4*DHD)  rows = [Wih0_ctx ; Whh0]   (gate order i,f,o,g)
    w1_ref   : (KVS+DHD, 4*KVS)  rows = [Whh1 ; Wih1]       (gate order i,f,o,g)
    charw_ref: (2*KVS, VOCAB)    tied embedding weights (transposed)
    """
    L = gx0_ref.shape[0]
    B = gx0_ref.shape[1]
    H0 = gx0_ref.shape[2] // 4
    S = key_ref.shape[1]
    KV = key_ref.shape[2]
    V = charb_ref.shape[1]

    key3 = key_ref[...]                                  # (B, S, KV) resident
    value3 = value_ref[...]
    mask3 = mask_ref[...][:, None, :]                    # (B, 1, S), hoisted
    b1b = jnp.broadcast_to(b1_ref[...], (B, b1_ref.shape[1]))   # hoisted broadcasts
    cbb = jnp.broadcast_to(charb_ref[...], (B, V))
    inv_sqrt_d = jnp.float32(1.0 / float(np.sqrt(KV)))
    neg_big = jnp.float32(-1e30)                         # finite "-inf" (NaN-safe)

    def cell(gates, c):
        # gate columns [i | f | o | g]
        H = c.shape[1]
        sg = jax.nn.sigmoid(gates[:, :3 * H])
        gg = jnp.tanh(gates[:, 3 * H:])
        c_new = sg[:, H:2 * H] * c + sg[:, :H] * gg
        h_new = sg[:, 2 * H:3 * H] * jnp.tanh(c_new)
        return h_new, c_new

    def step(i, carry):
        h0, c0, h1, c1, ctx = carry
        # decoder LSTMCell 0 (char-embed part precomputed in gx0)
        g0 = gx0_ref[i] + jnp.dot(jnp.concatenate([ctx, h0], axis=1), w0_ref[...],
                                  preferred_element_type=jnp.float32)
        h0, c0 = cell(g0, c0)
        # decoder LSTMCell 1 (fed h of layer 0)
        g1 = b1b + jnp.dot(jnp.concatenate([h1, h0], axis=1), w1_ref[...],
                           preferred_element_type=jnp.float32)
        h1, c1 = cell(g1, c1)
        query = h1                                                        # (B, KV)
        # bmm attention on the MXU
        e3 = jnp.einsum('bqk,bsk->bqs', query[:, None, :], key3,
                        preferred_element_type=jnp.float32) * inv_sqrt_d  # (B,1,S)
        e3 = jnp.where(mask3 > 0, neg_big, e3)
        m = jnp.max(e3, axis=-1, keepdims=True)
        p3 = jnp.exp(e3 - m)
        a3 = p3 / jnp.sum(p3, axis=-1, keepdims=True)                     # (B,1,S)
        ctx = jnp.einsum('bqs,bsk->bqk', a3, value3,
                         preferred_element_type=jnp.float32)[:, 0, :]     # (B, KV)
        out_ctx = jnp.concatenate([query, ctx], axis=1)                   # (B, 2*KV)
        preds_ref[i] = cbb + jnp.dot(out_ctx, charw_ref[...],
                                     preferred_element_type=jnp.float32)
        attn_ref[i] = a3[:, 0, :]
        return (h0, c0, h1, c1, ctx)

    h0 = jnp.zeros((B, H0), jnp.float32)
    c0 = jnp.zeros((B, H0), jnp.float32)
    h1 = jnp.zeros((B, KV), jnp.float32)
    c1 = jnp.zeros((B, KV), jnp.float32)
    ctx0 = value3[:, 0, :]
    lax.fori_loop(0, L, step, (h0, c0, h1, c1, ctx0))

# ------------------------------ kernel wrappers ------------------------------

def linear_call(x, wt, b):
    N = x.shape[0]
    Dout = wt.shape[1]
    return pl.pallas_call(
        _linear_kernel,
        out_shape=jax.ShapeDtypeStruct((N, Dout), jnp.float32),
        in_specs=[VMEM_SPEC] * 3,
        out_specs=VMEM_SPEC,
    )(x, wt, b)


def bilstm_rec_call(gx_tbg, whh_bd):
    T, B, _ = gx_tbg.shape
    H2 = whh_bd.shape[0]
    return pl.pallas_call(
        _bilstm_rec_kernel,
        out_shape=jax.ShapeDtypeStruct((T, B, H2), jnp.float32),
        in_specs=[VMEM_SPEC] * 2,
        out_specs=VMEM_SPEC,
    )(gx_tbg, whh_bd)

# ------------------------------ glue / model code ------------------------------

def reverse_padded(x, lens):
    """Reverse each sequence within its valid length (emulates packed bwd direction)."""
    B, T, _ = x.shape
    t = jnp.arange(T, dtype=jnp.int32)[None, :]
    L = lens[:, None].astype(jnp.int32)
    idx = jnp.where(t < L, L - 1 - t, t)                 # (B, T)
    return x[jnp.arange(B)[:, None], idx]                # (B, T, D)


@jax.jit
def bidir_layer(x_btd, lens, wih_bd, b, whh_bd):
    """Bidirectional LSTM layer with packed-sequence semantics (pad_packed zeroing)."""
    B, T, D = x_btd.shape
    H2 = whh_bd.shape[0]
    H = H2 // 2
    G = wih_bd.shape[1]
    valid = (jnp.arange(T)[None, :] < lens[:, None]).astype(jnp.float32)   # (B, T)
    xr = reverse_padded(x_btd, lens)
    x_cat = jnp.concatenate([x_btd, xr], axis=-1)                          # (B, T, 2D)
    # Hoisted input projection for BOTH directions: one big MXU matmul (+bias).
    gx = linear_call(x_cat.reshape(B * T, 2 * D), wih_bd, b)
    gx = gx.reshape(B, T, G).transpose(1, 0, 2)                            # (T, B, 8H)
    hs = bilstm_rec_call(gx, whh_bd).transpose(1, 0, 2)                    # (B, T, 2H)
    hf = hs[:, :, :H]
    hb = reverse_padded(hs[:, :, H:], lens)
    out = jnp.concatenate([hf, hb], axis=-1)                               # (B, T, 2H)
    return out * valid[:, :, None]                                         # pad_packed zeroing


@jax.jit
def kv_project(out, kv_w_t, kv_b):
    B, S, D = out.shape
    kv = linear_call(out.reshape(B * S, D), kv_w_t, kv_b).reshape(B, S, -1)
    return kv[:, :, :KVS], kv[:, :, KVS:]


@jax.jit
def decode_all(y, embedding, dec0_wih_emb_t, dec0_b, dec0_w_cat,
               dec1_w_cat, dec1_b, char_b, key_mat, value, enc_len):
    B, S, _ = key_mat.shape
    L = y.shape[1]
    EM = embedding.shape[1]
    mask = (jnp.arange(S)[None, :] >= enc_len[:, None]).astype(jnp.float32)
    # teacher-forcing inputs: step 0 zeros, step i uses embedding of y[:, i-1]
    ce = jnp.concatenate([jnp.zeros((B, 1, EM), jnp.float32), embedding[y[:, :-1]]], axis=1)
    # hoist the char-embed part of dec0's input projection (+bias) out of the recurrence
    gx0 = linear_call(ce.reshape(B * L, EM), dec0_wih_emb_t, dec0_b)
    gx0 = gx0.reshape(B, L, -1).transpose(1, 0, 2)                         # (L, B, 4*DHD)
    char_w_t = embedding.T                                                 # weight tying
    preds, attn_all = pl.pallas_call(
        _decoder_kernel,
        out_shape=(jax.ShapeDtypeStruct((L, B, VOCAB), jnp.float32),
                   jax.ShapeDtypeStruct((L, B, S), jnp.float32)),
        in_specs=[VMEM_SPEC] * 9,
        out_specs=(VMEM_SPEC, VMEM_SPEC),
    )(gx0, key_mat, value, mask, dec0_w_cat, dec1_w_cat, dec1_b, char_w_t, char_b)
    return preds.transpose(1, 0, 2), attn_all                              # (B,L,V), (L,B,S)


def encoder_forward(params, x, x_len_np):
    lens = np.asarray(x_len_np).astype(np.int64)
    out = x[:, :int(lens.max()), :]
    p = params['enc_l0']
    out = bidir_layer(out, jnp.asarray(lens, jnp.int32), p['wih_bd'], p['b'], p['whh_bd'])
    p = params['pblstm']                                  # all 4 pBLSTMs share weights
    for _ in range(NUM_PBLSTM):
        B, T, D = out.shape
        if T % 2 == 1:
            out = out[:, :-1, :]
            T -= 1
        lens = lens // 2
        out = out.reshape(B, T // 2, D * 2)
        out = out[:, :int(lens.max()), :]                 # pack/pad trimming
        out = bidir_layer(out, jnp.asarray(lens, jnp.int32), p['wih_bd'], p['b'], p['whh_bd'])
    key_mat, value = kv_project(out, params['kv_w_t'], params['kv_b'])
    return key_mat, value, lens                           # encoder_len


def decoder_forward(params, key_mat, value, encoder_len_np, y):
    enc_len = jnp.asarray(encoder_len_np, jnp.int32)
    predictions, attn_all = decode_all(
        y, params['embedding'], params['dec0_wih_emb_t'], params['dec0_b'],
        params['dec0_w_cat'], params['dec1_w_cat'], params['dec1_b'],
        params['char_b'], key_mat, value, enc_len)
    argmax_b = int(np.argmax(np.asarray(encoder_len_np)))
    attentions = attn_all[:, argmax_b, :]                 # (L, S)  (== encoder_len.argmax())
    return predictions, attentions


def seq2seq_forward(params, x, x_len_np, y):
    key_mat, value, encoder_len = encoder_forward(params, x, x_len_np)
    return decoder_forward(params, key_mat, value, encoder_len, y)

# ------------------------------ parameter init ------------------------------

def _split_reorder(w_t):
    """Split (In, 4H) columns in PyTorch order i,f,g,o and return them in order i,f,o,g."""
    i, f, g, o = jnp.split(w_t, 4, axis=1)
    return [i, f, o, g]


def _split_reorder_b(b):
    i, f, g, o = jnp.split(b, 4)
    return [i, f, o, g]


def build_bidir(pf, pr, D, H):
    """Merge fwd/bwd LSTM weights into block-diagonal form with gate layout
    [i_f i_r | f_f f_r | o_f o_r | g_f g_r]."""
    Wf, Wr = _split_reorder(pf['wih'].T), _split_reorder(pr['wih'].T)
    Uf, Ur = _split_reorder(pf['whh'].T), _split_reorder(pr['whh'].T)
    bf = _split_reorder_b(pf['bih'] + pf['bhh'])
    br = _split_reorder_b(pr['bih'] + pr['bhh'])
    zD = jnp.zeros((D, H), jnp.float32)
    zH = jnp.zeros((H, H), jnp.float32)
    wih_cols, whh_cols, b_cols = [], [], []
    for k in range(4):
        wih_cols += [jnp.concatenate([Wf[k], zD], axis=0),
                     jnp.concatenate([zD, Wr[k]], axis=0)]
        whh_cols += [jnp.concatenate([Uf[k], zH], axis=0),
                     jnp.concatenate([zH, Ur[k]], axis=0)]
        b_cols += [bf[k], br[k]]
    return dict(wih_bd=jnp.concatenate(wih_cols, axis=1),      # (2D, 8H)
                whh_bd=jnp.concatenate(whh_cols, axis=1),      # (2H, 8H)
                b=jnp.concatenate(b_cols).reshape(1, -1))      # (1, 8H)


def build_cell(p):
    """LSTMCell weights pre-transposed with gate columns reordered to [i f o g]."""
    wih_t = jnp.concatenate(_split_reorder(p['wih'].T), axis=1)
    whh_t = jnp.concatenate(_split_reorder(p['whh'].T), axis=1)
    b = jnp.concatenate(_split_reorder_b(p['bih'] + p['bhh'])).reshape(1, -1)
    return wih_t, whh_t, b


def init_params(seed=1234):
    kit = iter(jax.random.split(jax.random.PRNGKey(seed), 64))

    def w(shape, scale=0.1):
        return jax.random.normal(next(kit), shape, dtype=jnp.float32) * scale

    def lstm_raw(D, H):
        return dict(wih=w((4 * H, D)), whh=w((4 * H, H)), bih=w((4 * H,)), bhh=w((4 * H,)))

    params = {
        'enc_l0': build_bidir(lstm_raw(INPUT_DIM, EHD), lstm_raw(INPUT_DIM, EHD), INPUT_DIM, EHD),
        'pblstm': build_bidir(lstm_raw(4 * EHD, EHD), lstm_raw(4 * EHD, EHD), 4 * EHD, EHD),
    }
    # fused key/value projection: one (2*EHD, 2*KVS) weight, output split into key|value
    key_w, key_b = w((KVS, 2 * EHD)), w((KVS,))
    val_w, val_b = w((KVS, 2 * EHD)), w((KVS,))
    params['kv_w_t'] = jnp.concatenate([key_w.T, val_w.T], axis=1)          # (2*EHD, 256)
    params['kv_b'] = jnp.concatenate([key_b, val_b]).reshape(1, -1)

    # decoder LSTMCell 0: input = [char_embed(EMBED) | context(KVS)]
    wih0_t, whh0_t, b0 = build_cell(lstm_raw(EMBED + KVS, DHD))
    params['dec0_wih_emb_t'] = wih0_t[:EMBED]                               # (EMBED, 4*DHD)
    params['dec0_b'] = b0
    params['dec0_w_cat'] = jnp.concatenate([wih0_t[EMBED:], whh0_t], axis=0)  # (KVS+DHD, 4*DHD)
    # decoder LSTMCell 1: input = h of layer 0, hidden = KVS
    wih1_t, whh1_t, b1 = build_cell(lstm_raw(DHD, KVS))
    params['dec1_w_cat'] = jnp.concatenate([whh1_t, wih1_t], axis=0)          # (KVS+DHD, 4*KVS)
    params['dec1_b'] = b1

    params['char_b'] = w((VOCAB,)).reshape(1, -1)
    emb = w((VOCAB, EMBED))
    params['embedding'] = emb.at[0].set(0.0)                                # padding_idx=0
    return params

# ----------------------------------- main -----------------------------------

if __name__ == "__main__":
    B, T, LY = 2, 32, 6
    k_param, k_x, k_y = jax.random.split(jax.random.PRNGKey(0), 3)

    params = init_params(1234)
    x = jax.random.normal(k_x, (B, T, INPUT_DIM), dtype=jnp.float32)
    x_len = np.array([32, 24], dtype=np.int32)            # downsampled 16x -> [2, 1]
    y = jax.random.randint(k_y, (B, LY), 1, VOCAB, dtype=jnp.int32)

    predictions, attentions = seq2seq_forward(params, x, x_len, y)
    predictions, attentions = jax.block_until_ready((predictions, attentions))

    assert predictions.shape == (B, LY, VOCAB), predictions.shape
    assert attentions.shape == (LY, 2), attentions.shape
    assert bool(jnp.all(jnp.isfinite(predictions))) and bool(jnp.all(jnp.isfinite(attentions)))
    print("KERNEL_OK")
</pallas_src>

<mosaic_0001>
module attributes {stable_mosaic.version = 11 : i64} {
  func.func @_linear_kernel(%arg0: memref<64x16xf32, #tpu.memory_space<vmem>>, %arg1: memref<16x256xf32, #tpu.memory_space<vmem>>, %arg2: memref<1x256xf32, #tpu.memory_space<vmem>>, %arg3: memref<64x256xf32, #tpu.memory_space<vmem>>) attributes {dimension_semantics = [], scalar_prefetch = 0 : i64, scratch_operands = 0 : i64, tpu.core_type = #tpu.core_type<tc>} {
    %c0 = arith.constant 0 : index
    %c0_0 = arith.constant 0 : index
    %0 = vector.load %arg0[%c0, %c0_0] : memref<64x16xf32, #tpu.memory_space<vmem>>, vector<64x16xf32>
    %c0_1 = arith.constant 0 : index
    %c0_2 = arith.constant 0 : index
    %1 = vector.load %arg1[%c0_1, %c0_2] : memref<16x256xf32, #tpu.memory_space<vmem>>, vector<16x256xf32>
    %cst = arith.constant dense<0.000000e+00> : vector<64x256xf32>
    %2 = tpu.matmul %0, %1, %cst {dimension_numbers = #tpu.dot_dimension_numbers<[1], [0], [0], [1], [0, 0, 1, 1], [], []>} : vector<64x16xf32>, vector<16x256xf32>, vector<64x256xf32> -> vector<64x256xf32>
    %c0_3 = arith.constant 0 : index
    %c0_4 = arith.constant 0 : index
    %3 = vector.load %arg2[%c0_3, %c0_4] : memref<1x256xf32, #tpu.memory_space<vmem>>, vector<1x256xf32>
    %4 = vector.broadcast %3 : vector<1x256xf32> to vector<64x256xf32>
    %5 = arith.addf %2, %4 : vector<64x256xf32>
    %c0_5 = arith.constant 0 : index
    %c0_6 = arith.constant 0 : index
    %6 = vector.load %arg3[%c0_5, %c0_6] : memref<64x256xf32, #tpu.memory_space<vmem>>, vector<64x256xf32>
    tpu.vector_store %arg3[%c0_5, %c0_6], %5 {strides = array<i32>} : memref<64x256xf32, #tpu.memory_space<vmem>>, vector<64x256xf32>,
    return
  }
}

module attributes {stable_mosaic.version = 11 : i64} {
  func.func @_bilstm_rec_kernel(%arg0: memref<32x2x256xf32, #tpu.memory_space<vmem>>, %arg1: memref<64x256xf32, #tpu.memory_space<vmem>>, %arg2: memref<32x2x64xf32, #tpu.memory_space<vmem>>) attributes {dimension_semantics = [], scalar_prefetch = 0 : i64, scratch_operands = 0 : i64, tpu.core_type = #tpu.core_type<tc>} {
    %cst = arith.constant 0.000000e+00 : f32
    %0 = vector.broadcast %cst : f32 to vector<2x64xf32>
    %c0_i32 = arith.constant 0 : i32
    %c32_i32 = arith.constant 32 : i32
    %1 = arith.addi %c0_i32, %c32_i32 : i32
    %c1_i32 = arith.constant 1 : i32
    %2:2 = scf.for %arg3 = %c0_i32 to %1 step %c1_i32 iter_args(%arg4 = %0, %arg5 = %0) -> (vector<2x64xf32>, vector<2x64xf32>)  : i32 {
      %3 = arith.index_cast %arg3 : i32 to index
      %c0 = arith.constant 0 : index
      %c0_1 = arith.constant 0 : index
      %4 = vector.load %arg0[%3, %c0, %c0_1] : memref<32x2x256xf32, #tpu.memory_space<vmem>>, vector<1x2x256xf32>
      %5 = vector.shape_cast %4 : vector<1x2x256xf32> to vector<2x256xf32>
      %c0_2 = arith.constant 0 : index
      %c0_3 = arith.constant 0 : index
      %6 = vector.load %arg1[%c0_2, %c0_3] : memref<64x256xf32, #tpu.memory_space<vmem>>, vector<64x256xf32>
      %cst_4 = arith.constant dense<0.000000e+00> : vector<2x256xf32>
      %7 = tpu.matmul %arg4, %6, %cst_4 {dimension_numbers = #tpu.dot_dimension_numbers<[1], [0], [0], [1], [0, 0, 1, 1], [], []>} : vector<2x64xf32>, vector<64x256xf32>, vector<2x256xf32> -> vector<2x256xf32>
      %8 = arith.addf %5, %7 : vector<2x256xf32>
      %9 = vector.extract_strided_slice %8 {offsets = [0, 0], sizes = [2, 192], strides = [1, 1]} : vector<2x256xf32> to vector<2x192xf32>
      %10 = arith.negf %9 : vector<2x192xf32>
      %11 = math.exp %10 : vector<2x192xf32>
      %cst_5 = arith.constant 1.000000e+00 : f32
      %12 = vector.broadcast %cst_5 : f32 to vector<2x192xf32>
      %13 = arith.addf %12, %11 : vector<2x192xf32>
      %14 = arith.divf %12, %13 : vector<2x192xf32>
      %15 = vector.extract_strided_slice %8 {offsets = [0, 192], sizes = [2, 64], strides = [1, 1]} : vector<2x256xf32> to vector<2x64xf32>
      %16 = math.tanh %15 : vector<2x64xf32>
      %17 = vector.extract_strided_slice %14 {offsets = [0, 64], sizes = [2, 64], strides = [1, 1]} : vector<2x192xf32> to vector<2x64xf32>
      %18 = arith.mulf %17, %arg5 : vector<2x64xf32>
      %19 = vector.extract_strided_slice %14 {offsets = [0, 0], sizes = [2, 64], strides = [1, 1]} : vector<2x192xf32> to vector<2x64xf32>
      %20 = arith.mulf %19, %16 : vector<2x64xf32>
      %21 = arith.addf %18, %20 : vector<2x64xf32>
      %22 = vector.extract_strided_slice %14 {offsets = [0, 128], sizes = [2, 64], strides = [1, 1]} : vector<2x192xf32> to vector<2x64xf32>
      %23 = math.tanh %21 : vector<2x64xf32>
      %24 = arith.mulf %22, %23 : vector<2x64xf32>
      %25 = arith.index_cast %arg3 : i32 to index
      %c0_6 = arith.constant 0 : index
      %c0_7 = arith.constant 0 : index
      %26 = vector.load %arg2[%25, %c0_6, %c0_7] : memref<32x2x64xf32, #tpu.memory_space<vmem>>, vector<1x2x64xf32>
      %27 = vector.shape_cast %26 : vector<1x2x64xf32> to vector<2x64xf32>
      %28 = vector.shape_cast %24 : vector<2x64xf32> to vector<1x2x64xf32>
      tpu.vector_store %arg2[%25, %c0_6, %c0_7], %28 {strides = array<i32>} : memref<32x2x64xf32, #tpu.memory_space<vmem>>, vector<1x2x64xf32>,
      scf.yield %24, %21 : vector<2x64xf32>, vector<2x64xf32>
    }
    %c32_i32_0 = arith.constant 32 : i32
    return
  }
}

</mosaic_0001>

<bundles_post_ra>
// kernel: bidir_layer.2
= control target key start
LH: loop header
LB: loop body
LE: loop exit
PB: predicated region body
PF: predicated region fallthrough
CT: control target
= control target key end

     0   :  { %v209_v3 = vmov 0.0   ;;  %vm38_vm0 = vcmask 130048   ;;  %v28_v13 = vlaneseq  ;;  %s325_s1 = inlined_call_operand.vmem [shape: f32[16,256], index: 1, kind: input, shape index: {}]   ;;  %s326_s0 = inlined_call_operand.vmem [shape: f32[64,16], index: 0, kind: input, shape index: {}]   ;;  %s327_s2 = inlined_call_operand.vmem [shape: f32[1,256], index: 2, kind: input, shape index: {}]   ;;  %s328_s3 = inlined_call_operand.vmem [shape: f32[64,256], index: 3, kind: output, shape index: {}]  }
   0x1   :  { %v25_v0 = vld [vmem:[%s325_s1 + $0x18] sm:$0xff]  ;;  %v24_v1 = vld [vmem:[%s325_s1 + $0x10] sm:$0xff]  ;;  %v23_v2 = vld [vmem:[%s325_s1 + $0x8] sm:$0xff]  ;;  %127 = vmatprep.mubr.f32.mxu0 %v209_v3  ;;  %151 = vmatprep.mubr.f32.mxu1 %v209_v3 }
   0x2   :  { %91 = vmatprep.subr.mxu0 %v25_v0  ;;  %204 = vmatprep.subr.mxu1 %v25_v0  ;;  %v22_v4 = vld [vmem:[%s325_s1] sm:$0xff]  ;;  %v15_v7 = vld [vmem:[%s326_s0 + $0x8] sm:$0xff]  ;;  %v16_v9 = vld [vmem:[%s326_s0 + $0x10] sm:$0xff]  ;;  %v29_v14 = vshrl.u32 %v28_v13, 7 }
   0x3   :  { %92 = vmatpush1.msra.mxu0 %v24_v1  ;;  %206 = vmatpush1.msra.mxu1 %v24_v1  ;;  %v14_v5 = vld [vmem:[%s326_s0] sm:$0xff]  ;;  %v19_v8 = vld [vmem:[%s326_s0 + $0x28] sm:$0xff]  ;;  %v20_v10 = vld [vmem:[%s326_s0 + $0x30] sm:$0xff] }
   0x4   :  { %v18_v6 = vld [vmem:[%s326_s0 + $0x20] sm:$0xff]  ;;  %93 = vmatprep.subr.mxu0 %v23_v2  ;;  %205 = vmatprep.subr.mxu1 %v23_v2  ;;  %v17_v11 = vld [vmem:[%s326_s0 + $0x18] sm:$0xff]  ;;  %v30_v15 = vsub.s32 0, %v29_v14  ;;  %v34_v17 = vsub.s32 1, %v29_v14 }
   0x5   :  { %94 = vmatpush1.msra.mxu0 %v22_v4  ;;  %207 = vmatpush1.msra.mxu1 %v22_v4  ;;  %v21_v12 = vld [vmem:[%s326_s0 + $0x38] sm:$0xff]  ;;  %v26_v16 = vld [vmem:[%s327_s2] sm:$0x3] }
   0x6   :  { %196 = vmatmul.mubr.msk.f32.vlgmr.msra.gmra.mxu0 %vm38_vm0, %v14_v5  ;;  %200 = vmatmul.mubr.msk.f32.vlgmr.msra.gmra.mxu1 %vm38_vm0, %v18_v6  ;;  %v31_v18 = vrot.slane %v26_v16, %v30_v15  ;;  %v35_v19 = vrot.slane %v26_v16, %v34_v17 }
   0x7   :  { %133 = vmatprep.mubr.f32.mxu0 %v209_v3  ;;  %157 = vmatprep.mubr.f32.mxu1 %v209_v3 }
   0xa   :  { %197 = vmatmul.mubr.msk.f32.gmra.mxu0 %vm38_vm0, %v15_v7  ;;  %201 = vmatmul.mubr.msk.f32.gmra.mxu1 %vm38_vm0, %v19_v8 }
   0xb   :  { %139 = vmatprep.mubr.f32.mxu0 %v209_v3  ;;  %163 = vmatprep.mubr.f32.mxu1 %v209_v3 }
   0xe   :  { %198 = vmatmul.mubr.msk.f32.gmra.mxu0 %vm38_vm0, %v16_v9  ;;  %202 = vmatmul.mubr.msk.f32.gmra.mxu1 %vm38_vm0, %v20_v10 }
   0xf   :  { %145 = vmatprep.mubr.f32.mxu0 %v209_v3  ;;  %169 = vmatprep.mubr.f32.mxu1 %v209_v3 }
  0x12   :  { %199 = vmatmul.mubr.msk.f32.gmra.mxu0 %vm38_vm0, %v17_v11  ;;  %203 = vmatmul.mubr.msk.f32.gmra.mxu1 %vm38_vm0, %v21_v12 }
  0xc6   :  { %v129_v20 = vpop.f32.mrf.mxu0  ;;  %v153_v21 = vpop.f32.mrf.mxu1 }
  0xc7   :  { %v130_v22 = vadd.f32 %v129_v20, %v31_v18  ;;  %v154_v23 = vadd.f32 %v153_v21, %v31_v18 }
  0xc8   :  { %v131_v24 = vpop.f32.mrf.mxu0  ;;  %v155_v25 = vpop.f32.mrf.mxu1 }
  0xc9   :  { %176 = vst [vmem:[%s328_s3] sm:$0xff] %v130_v22  ;;  %184 = vst [vmem:[%s328_s3 + $0x40] sm:$0xff] %v154_v23  ;;  %v132_v26 = vadd.f32 %v131_v24, %v35_v19  ;;  %v156_v27 = vadd.f32 %v155_v25, %v35_v19 }
  0xca   :  { %v135_v28 = vpop.f32.mrf.mxu0  ;;  %v159_v29 = vpop.f32.mrf.mxu1 }
  0xcb   :  { %177 = vst [vmem:[%s328_s3 + $0x8] sm:$0xff] %v132_v26  ;;  %185 = vst [vmem:[%s328_s3 + $0x48] sm:$0xff] %v156_v27  ;;  %v136_v30 = vadd.f32 %v135_v28, %v31_v18  ;;  %v160_v31 = vadd.f32 %v159_v29, %v31_v18 }
  0xcc   :  { %v137_v32 = vpop.f32.mrf.mxu0  ;;  %v161_v33 = vpop.f32.mrf.mxu1 }
  0xcd   :  { %178 = vst [vmem:[%s328_s3 + $0x10] sm:$0xff] %v136_v30  ;;  %186 = vst [vmem:[%s328_s3 + $0x50] sm:$0xff] %v160_v31  ;;  %v138_v34 = vadd.f32 %v137_v32, %v35_v19  ;;  %v162_v35 = vadd.f32 %v161_v33, %v35_v19 }
  0xce   :  { %v141_v36 = vpop.f32.mrf.mxu0  ;;  %v165_v37 = vpop.f32.mrf.mxu1 }
  0xcf   :  { %179 = vst [vmem:[%s328_s3 + $0x18] sm:$0xff] %v138_v34  ;;  %187 = vst [vmem:[%s328_s3 + $0x58] sm:$0xff] %v162_v35  ;;  %v142_v38 = vadd.f32 %v141_v36, %v31_v18  ;;  %v166_v39 = vadd.f32 %v165_v37, %v31_v18 }
  0xd0   :  { %v143_v40 = vpop.f32.mrf.mxu0  ;;  %v167_v41 = vpop.f32.mrf.mxu1 }
  0xd1   :  { %180 = vst [vmem:[%s328_s3 + $0x20] sm:$0xff] %v142_v38  ;;  %188 = vst [vmem:[%s328_s3 + $0x60] sm:$0xff] %v166_v39  ;;  %v144_v42 = vadd.f32 %v143_v40, %v35_v19  ;;  %v168_v43 = vadd.f32 %v167_v41, %v35_v19 }
  0xd2   :  { %v147_v44 = vpop.f32.mrf.mxu0  ;;  %v171_v45 = vpop.f32.mrf.mxu1 }
  0xd3   :  { %181 = vst [vmem:[%s328_s3 + $0x28] sm:$0xff] %v144_v42  ;;  %189 = vst [vmem:[%s328_s3 + $0x68] sm:$0xff] %v168_v43  ;;  %v148_v46 = vadd.f32 %v147_v44, %v31_v18  ;;  %v172_v47 = vadd.f32 %v171_v45, %v31_v18 }
  0xd4   :  { %v149_v48 = vpop.f32.mrf.mxu0  ;;  %v173_v49 = vpop.f32.mrf.mxu1 }
  0xd5   :  { %182 = vst [vmem:[%s328_s3 + $0x30] sm:$0xff] %v148_v46  ;;  %190 = vst [vmem:[%s328_s3 + $0x70] sm:$0xff] %v172_v47  ;;  %v150_v50 = vadd.f32 %v149_v48, %v35_v19  ;;  %v174_v51 = vadd.f32 %v173_v49, %v35_v19 }
  0xd7   :  { %183 = vst [vmem:[%s328_s3 + $0x38] sm:$0xff] %v150_v50  ;;  %191 = vst [vmem:[%s328_s3 + $0x78] sm:$0xff] %v174_v51 }

// kernel: bidir_layer.3
= control target key start
LH: loop header
LB: loop body
LE: loop exit
PB: predicated region body
PF: predicated region fallthrough
CT: control target
= control target key end

     0   :  { %v258_v0 = vmov 0.0   ;;  %v260_v1 = vmov 0.0   ;;  %s262_s9 = smov 0   ;;  %s335_s0 = inlined_call_operand.vmem [shape: f32[32,2,256], index: 0, kind: input, shape index: {}]   ;;  %s336_s1 = inlined_call_operand.vmem [shape: f32[64,256], index: 1, kind: input, shape index: {}]   ;;  %s337_s2 = inlined_call_operand.vmem [shape: f32[32,2,64], index: 2, kind: output, shape index: {}]  }
   0x1 LB: > { %v38_v2 = vld [vmem:[%s336_s1 + $0x78] sm:$0xff]  ;;  %v37_v3 = vld [vmem:[%s336_s1 + $0x70] sm:$0xff]  ;;  %v36_v4 = vld [vmem:[%s336_s1 + $0x68] sm:$0xff]  ;;  %v240_v6 = vmov 0.0   ;;  %vm39_vm0 = vcmask 523264   ;;  %v120_v21 = vlaneseq  ;;  %s180_s15 = sshll.u32 %s238_s9, 2  ;;  %s238_s9 = sphi %s262_s9, %s16_s9   ;;  %v234_v1 = vphi %v260_v1, %v153_v1   ;;  %v230_v0 = vphi %v258_v0, %v144_v0  }
   0x2   : > { %59 = vmatprep.subr.mxu0 %v38_v2  ;;  %v35_v5 = vld [vmem:[%s336_s1 + $0x60] sm:$0xff]  ;;  %107 = vmatprep.mubr.f32.mxu0 %v240_v6  ;;  %v34_v7 = vld [vmem:[%s336_s1 + $0x58] sm:$0xff]  ;;  %v33_v8 = vld [vmem:[%s336_s1 + $0x50] sm:$0xff]  ;;  %v241_v19 = vmov 1983009808   ;;  %s21_s18 = scalar_lea.vmem %s335_s0, %s180_s15  ;;  %s242_s19 = smov 64  }
   0x3   : > { %60 = vmatpush1.msra.mxu0 %v37_v3  ;;  %v32_v9 = vld [vmem:[%s336_s1 + $0x48] sm:$0xff]  ;;  %v31_v10 = vld [vmem:[%s336_s1 + $0x40] sm:$0xff]  ;;  %v30_v11 = vld [vmem:[%s336_s1 + $0x38] sm:$0xff]  ;;  %v118_v20 = vunpack.c.l.s4 %v241_v19  ;;  %v121_v23 = vshrl.u32 %v120_v21, 7  ;;  %s176_s20 = sshll.u32 %s238_s9, 1  ;;  %vm155_vm1 = vcmask 517120  }
   0x4   : > { %61 = vmatprep.subr.mxu0 %v36_v4  ;;  %v29_v12 = vld [vmem:[%s336_s1 + $0x30] sm:$0xff]  ;;  %v28_v13 = vld [vmem:[%s336_s1 + $0x28] sm:$0xff]  ;;  %v27_v14 = vld [vmem:[%s336_s1 + $0x20] sm:$0xff]  ;;  %s154_s23 = scalar_lea.vmem %s337_s2, %s176_s20  ;;  %s16_s9 = sadd.s32 1, %s238_s9  }
   0x5   : > { %62 = vmatpush1.msra.mxu0 %v35_v5  ;;  %v26_v15 = vld [vmem:[%s336_s1 + $0x18] sm:$0xff]  ;;  %v25_v16 = vld [vmem:[%s336_s1 + $0x10] sm:$0xff]  ;;  %v24_v17 = vld [vmem:[%s336_s1 + $0x8] sm:$0xff]  ;;  %v119_v22 = vunpack.c.0.s8 %v118_v20  ;;  %p13_p0 = scmp.ge.s32.totalorder %s16_s9, 32  }
   0x6   : > { %63 = vmatprep.subr.mxu0 %v34_v7  ;;  %v23_v18 = vld [vmem:[%s336_s1] sm:$0xff] }
   0x7   : > { %64 = vmatpush1.msra.mxu0 %v33_v8  ;;  %v122_v25 = vsub.s32 %v119_v22, %v121_v23  ;;  %v22_v28 = vld [vmem:[%s21_s18] sm:$0xf] }
   0x8   : > { %65 = vmatprep.subr.mxu0 %v32_v9 }
   0x9   : > { %66 = vmatpush1.msra.mxu0 %v31_v10 }
   0xa   : > { %67 = vmatprep.subr.mxu0 %v30_v11 }
   0xb   : > { %68 = vmatpush1.msra.mxu0 %v29_v12 }
   0xc   : > { %69 = vmatprep.subr.mxu0 %v28_v13 }
   0xd   : > { %70 = vmatpush1.msra.mxu0 %v27_v14 }
   0xe   : > { %71 = vmatprep.subr.mxu0 %v26_v15 }
   0xf   : > { %72 = vmatpush1.msra.mxu0 %v25_v16 }
  0x10   : > { %73 = vmatprep.subr.mxu0 %v24_v17 }
  0x11   : > { %74 = vmatpush1.msra.mxu0 %v23_v18 }
  0x12   : > { %178 = vmatmul.mubr.msk.f32.vlgmr.msra.gmra.mxu0 %vm39_vm0, %v234_v1 }
  0xd2   : > { %v109_v24 = vpop.f32.mrf.mxu0 }
  0xd4   : > { %v111_v26 = vpop.f32.mrf.mxu0 }
  0xd5   : > { %v116_v27 = vcombine.low %v109_v24, %v111_v26 }
  0xd7   : > { %v123_v29 = vrot.slane %v116_v27, %v122_v25 }
  0xd9   : > { %v125_v30 = vadd.f32 %v123_v29, %v22_v28 }
  0xdb   : > { %133 = vrot.lane.b32.xlu0 %v125_v30, %s242_s19  ;;  %v179_v31 = vmul.f32 -1.442695, %v125_v30 }
  0xdd   : > { %208 = vpow2.f32 %v179_v31 }
  0xea   : > { %v209_v32 = vpop.eup %208 }
  0xeb   : > { %v129_v33 = vadd.f32 1.0, %v209_v32 }
  0xed   : > { %210 = vrcp.f32 %v129_v33 }
  0xfa   : > { %v211_v36 = vpop.eup %210 }
  0xfb   : > { %v138_v39 = vmul.f32 %v230_v0, %v211_v36  ;;  %v147_v42 = vrot.slane %v211_v36, 2 }
 0x14d   : > { %v134_v34 = vpop.permute.xlu0 %133 }
 0x14e   : > { %v135_v35 = vrot.slane %v134_v34, 2 }
 0x150   : > { %212 = vtanh.f32 %v135_v35 }
 0x15d   : > { %v213_v37 = vpop.eup %212 }
 0x15e   : > { %v139_v38 = vmul.f32 %v213_v37, %v211_v36 }
 0x160   : > { %141 = vrot.lane.b32.xlu0 %v139_v38, %s242_s19 }
 0x1d2   : > { %v142_v40 = vpop.permute.xlu0 %141 }
 0x1d3   : > { %v144_v0 = vadd.f32 %v142_v40, %v138_v39  }
 0x1d5   : > { %214 = vtanh.f32 %v144_v0 }
 0x1e2   : > { %v215_v41 = vpop.eup %214 }
 0x1e3   : > { %150 = vrot.lane.b32.xlu1 %v215_v41, %s242_s19 }
 0x254   :  { %15 = sbr.rel (!%p13_p0) target bundleno = 1 (0x1), region = 37 }
 0x255   : > { %v151_v43 = vpop.permute.xlu1 %150 }
 0x256   : > { %v153_v1 = vmul.f32 %v151_v43, %v147_v42  }
 0x258   : > { %156 = vst.msk [vmem:[%s154_s23] sm:$0x3] %vm155_vm1, %v153_v1 }

</bundles_post_ra>
